<compile_context>
chip_gen: v7x
topology: tpu7x:2x2x1
jax: 0.10.0
libtpu: 0.0.40
codegen_flags: <defaults>
</compile_context>

<pallas_src>
import jax
import jax.numpy as jnp
from jax.experimental import pallas as pl
from jax.experimental.pallas import tpu as pltpu

# Quantization config (deterministic, in-script).
BITS = 8
FRAC_BITS = 4
SCALE = float(2 ** FRAC_BITS)
INV_SCALE = 1.0 / SCALE
QMIN = float(-(2 ** (BITS - 1)))
QMAX = float(2 ** (BITS - 1) - 1)

LANES = 128
MIN_GRID_STEPS = 8            # >=4 steps per core on v7x's 2 TCs, enough to pipeline
MIN_BLOCK_BYTES = 128 * 1024  # don't split below this; per-step overhead would dominate

_BLOCK_BYTES_CACHE = None


def _per_array_block_bytes():
    """Per-array VMEM block budget, generation-aware.

    in + out arrays x double buffering => 4x this value of scoped VMEM:
      <=v5 : 2 MiB/array -> 8 MiB  (16 MiB scoped-VMEM default)
      v6e/v7x: 4 MiB/array -> 16 MiB (32 MiB scoped-VMEM default)
    """
    global _BLOCK_BYTES_CACHE
    if _BLOCK_BYTES_CACHE is None:
        try:
            kind = jax.devices()[0].device_kind.lower()
        except Exception:
            kind = ""
        if any(tag in kind for tag in ("v2", "v3", "v4", "v5")):
            _BLOCK_BYTES_CACHE = 2 * 1024 * 1024
        else:
            _BLOCK_BYTES_CACHE = 4 * 1024 * 1024
    return _BLOCK_BYTES_CACHE


def _quantize_kernel(x_ref, o_ref):
    # Upcast in-vreg; HBM traffic stays in the original (possibly bf16) dtype.
    x = x_ref[...].astype(jnp.float32)
    q = jnp.clip(jnp.round(x * SCALE), QMIN, QMAX)
    o_ref[...] = (q * INV_SCALE).astype(o_ref.dtype)


def _choose_cols(n):
    """Widest lane-dense (multiple-of-128) last dim that divides n exactly."""
    for cols in (4096, 2048, 1024, 512, 256, 128):
        if n % cols == 0:
            return cols
    return None


def _choose_row_tile(rows, cols, itemsize, block_bytes):
    """Row tile: dtype-aware sublane multiple, VMEM-budgeted, >=MIN_GRID_STEPS steps."""
    sub = max(8, 32 // itemsize)              # native packed sublane tile (f32:8, bf16:16, i8:32)
    bytes_per_row = cols * itemsize
    # Largest row count per block under the VMEM budget (multiple of `sub`).
    budget_rows = max(sub, (block_bytes // bytes_per_row) // sub * sub)
    # Smallest block worth a pipeline step.
    min_rows = max(sub, -(-MIN_BLOCK_BYTES // bytes_per_row))
    min_rows = -(-min_rows // sub) * sub
    # Aim for >= MIN_GRID_STEPS steps so the pipeline (and v7x's 2 TCs) have work.
    target_rows = max(sub, (rows // MIN_GRID_STEPS) // sub * sub)
    row_tile = min(budget_rows, max(min_rows, target_rows))
    if row_tile >= rows:
        return rows                           # tiny tensor: single full-extent block (always legal)
    # Prefer a nearby exact divisor so no masked edge block is emitted.
    t = row_tile
    lo = max(sub, row_tile // 2)
    while t >= lo:
        if rows % t == 0:
            return t
        t -= sub
    return row_tile                           # accept one masked edge block (minor)


def _quantize_2d(x2d):
    """x2d: (rows, cols) with cols a multiple of 128."""
    rows, cols = x2d.shape
    itemsize = jnp.dtype(x2d.dtype).itemsize
    row_tile = _choose_row_tile(rows, cols, itemsize, _per_array_block_bytes())
    grid = (pl.cdiv(rows, row_tile),)
    nbytes = rows * cols * itemsize
    # NOTE: buffers stay under the scoped-VMEM default on every generation, so no
    # explicit vmem_limit_bytes is needed.  input_output_aliases is intentionally
    # not used: without caller-side donation it would just force an extra copy.
    return pl.pallas_call(
        _quantize_kernel,
        out_shape=jax.ShapeDtypeStruct((rows, cols), x2d.dtype),
        grid_spec=pltpu.PrefetchScalarGridSpec(
            num_scalar_prefetch=0,
            grid=grid,
            in_specs=[pl.BlockSpec((row_tile, cols), lambda i: (i, 0))],
            out_specs=pl.BlockSpec((row_tile, cols), lambda i: (i, 0)),
        ),
        compiler_params=pltpu.CompilerParams(
            dimension_semantics=("parallel",)),
        cost_estimate=pl.CostEstimate(
            flops=4 * rows * cols,
            transcendentals=0,
            bytes_accessed=2 * nbytes),
    )(x2d)


def _quantize_small(x_flat, out_dtype):
    """Plain elementwise quantize for the <128-element ragged tail."""
    xf = x_flat.astype(jnp.float32)
    q = jnp.clip(jnp.round(xf * SCALE), QMIN, QMAX)
    return (q * INV_SCALE).astype(out_dtype)


def quantized_activation_forward(x,
                                 quantize_train=True,
                                 quantize_eval=True,
                                 training=False,
                                 error_model=None):
    """Mirrors QuantizedActivation.forward for an NCHW (or any-shape) input."""
    check_q = ((quantize_train and training)
               or (quantize_eval and not training)
               or (quantize_train and quantize_eval))
    if not check_q:
        return x

    orig_shape = x.shape
    flat = x.reshape(-1)
    n = flat.shape[0]
    cols = _choose_cols(n)
    if cols is not None:
        # Clean factorization: no pad, no slice, no dtype round-trips in HBM.
        y2d = _quantize_2d(flat.reshape(n // cols, cols))
        out = y2d.reshape(orig_shape)
    else:
        # Ragged length (rare for activations): kernel on the 128-aligned prefix,
        # plain elementwise ops on the <128-element tail.  No full-array pad/slice.
        n_aligned = (n // LANES) * LANES
        pieces = []
        if n_aligned:
            prefix = flat[:n_aligned].reshape(n_aligned // LANES, LANES)
            pieces.append(_quantize_2d(prefix).reshape(-1))
        if n_aligned < n:
            pieces.append(_quantize_small(flat[n_aligned:], x.dtype))
        out = pieces[0] if len(pieces) == 1 else jnp.concatenate(pieces)
        out = out.reshape(orig_shape)
    # TODO(synk): error_model.applyErrorModel (bit-flip injection) has no concrete
    # definition in the reference; not implemented (error_model is None by default).
    return out


def _reference(x):
    xf = x.astype(jnp.float32)
    q = jnp.clip(jnp.round(xf * SCALE), QMIN, QMAX)
    return (q / SCALE).astype(x.dtype)


if __name__ == "__main__":
    key = jax.random.PRNGKey(0)

    # 1) Small NCHW f32 activation (module's implied shape).
    x = jax.random.normal(key, (2, 4, 16, 16), dtype=jnp.float32)
    y = jax.block_until_ready(quantized_activation_forward(
        x, quantize_train=True, quantize_eval=True, training=False))
    y_ref = _reference(x)
    assert y.shape == x.shape and y.dtype == x.dtype
    assert jnp.max(jnp.abs(y - y_ref)) < 1e-6

    # 2) Larger bf16 activation: exercises the multi-block pipelined path
    #    (>= MIN_GRID_STEPS steps) and dtype-aware sublane tiling.
    x_big = jax.random.normal(jax.random.PRNGKey(1), (8, 32, 64, 64),
                              dtype=jnp.bfloat16)
    y_big = jax.block_until_ready(quantized_activation_forward(x_big))
    y_big_ref = _reference(x_big)
    assert y_big.shape == x_big.shape and y_big.dtype == x_big.dtype
    assert jnp.max(jnp.abs(y_big.astype(jnp.float32)
                           - y_big_ref.astype(jnp.float32))) < 1e-6

    # 3) Ragged size: exercises the prefix-kernel + tiny-tail fallback.
    x_rag = jax.random.normal(jax.random.PRNGKey(2), (3, 7, 11),
                              dtype=jnp.float32)
    y_rag = jax.block_until_ready(quantized_activation_forward(x_rag))
    y_rag_ref = _reference(x_rag)
    assert y_rag.shape == x_rag.shape and y_rag.dtype == x_rag.dtype
    assert jnp.max(jnp.abs(y_rag - y_rag_ref)) < 1e-6

    print("KERNEL_OK")
</pallas_src>

<mosaic_0001>
module attributes {stable_mosaic.version = 11 : i64} {
  func.func @_quantize_kernel(%arg0: i32, %arg1: memref<1x2048xf32, #tpu.memory_space<vmem>>, %arg2: memref<1x2048xf32, #tpu.memory_space<vmem>>) attributes {dimension_semantics = [#tpu.dimension_semantics<parallel>], iteration_bounds = array<i64: 1>, scalar_prefetch = 0 : i64, scratch_operands = 0 : i64, tpu.core_type = #tpu.core_type<tc>, window_params = [{transform_indices = @transform_0, window_bounds = array<i64: 1, 2048>}, {transform_indices = @transform_1, window_bounds = array<i64: 1, 2048>}]} {
    %c0 = arith.constant 0 : index
    %c0_0 = arith.constant 0 : index
    %0 = vector.load %arg1[%c0, %c0_0] : memref<1x2048xf32, #tpu.memory_space<vmem>>, vector<1x2048xf32>
    %cst = arith.constant 1.600000e+01 : f32
    %1 = vector.broadcast %cst : f32 to vector<1x2048xf32>
    %2 = arith.mulf %0, %1 : vector<1x2048xf32>
    %3 = math.roundeven %2 : vector<1x2048xf32>
    %cst_1 = arith.constant -1.280000e+02 : f32
    %cst_2 = arith.constant 1.270000e+02 : f32
    %4 = vector.broadcast %cst_1 : f32 to vector<1x2048xf32>
    %5 = arith.maximumf %4, %3 : vector<1x2048xf32>
    %6 = vector.broadcast %cst_2 : f32 to vector<1x2048xf32>
    %7 = arith.minimumf %6, %5 : vector<1x2048xf32>
    %cst_3 = arith.constant 6.250000e-02 : f32
    %8 = vector.broadcast %cst_3 : f32 to vector<1x2048xf32>
    %9 = arith.mulf %7, %8 : vector<1x2048xf32>
    %c0_4 = arith.constant 0 : index
    %c0_5 = arith.constant 0 : index
    %10 = vector.load %arg2[%c0_4, %c0_5] : memref<1x2048xf32, #tpu.memory_space<vmem>>, vector<1x2048xf32>
    tpu.vector_store %arg2[%c0_4, %c0_5], %9 {strides = array<i32>} : memref<1x2048xf32, #tpu.memory_space<vmem>>, vector<1x2048xf32>,
    return
  }
  func.func @transform_0(%arg0: i32) -> (i32, i32) {
    %c0_i32 = arith.constant 0 : i32
    %c0_i32_0 = arith.constant 0 : i32
    return %arg0, %c0_i32 : i32, i32
  }
  func.func @transform_1(%arg0: i32) -> (i32, i32) {
    %c0_i32 = arith.constant 0 : i32
    %c0_i32_0 = arith.constant 0 : i32
    return %arg0, %c0_i32 : i32, i32
  }
}

</mosaic_0001>

<bundles_post_ra>
// kernel: tpu_custom_call.1
= control target key start
LH: loop header
LB: loop body
LE: loop exit
PB: predicated region body
PF: predicated region fallthrough
CT: control target
= control target key end

     0   :  { %6 = vsyncpa [#allocation3], 0  ;;  %s138_s0 = inlined_call_operand.hbm [shape: f32[1,2048], index: 0, kind: input, shape index: {}]   ;;  %s139_s1 = inlined_call_operand.hbm [shape: f32[1,2048], index: 1, kind: output, shape index: {}]  }
   0x1   :  { %7 = vsyncpa [#allocation4], 0  ;;  %s102_s6 = smov [#allocation2]   ;;  %s54_s10 = scalar_lea.hbm %s138_s0, 256 }
   0x2   :  { %s14_s7 = sshll.u32 %s102_s6, 4  ;;  %p55_p0 = scmp.ne.s32.totalorder %s138_s0, %s54_s10  ;;  %s15_s7 = int_to_ptr.vmem [resolvable:$true] %s14_s7 }
   0x3   :  { %p58_p1 = scmp.lt.u32.totalorder %s54_s10, %s138_s0 }
   0x5   :  { %p60_p2 = pnand %p58_p1, %p55_p0 }
   0x7   :  { %63 = shalt.err (!%p60_p2)
}
   0x8   :  { %s64_s15 = scalar_lea.vmem %s15_s7, 256  ;;  %p69_p4 = scmp.lt.s32.totalorder %s15_s7, %s15_s7 }
   0x9   :  { %p65_p3 = scmp.ne.s32.totalorder %s15_s7, %s64_s15  ;;  %p70_p5 = scmp.lt.s32.totalorder %s64_s15, %s64_s15 }
   0xb   :  { %p71_p6 = por %p70_p5, %p69_p4 }
   0xd   :  { %p72_p7 = pnand %p71_p6, %p65_p3 }
   0xf   :  { %75 = shalt.err (!%p72_p7)
}
  0x10   :  { %17 = dma.hbm_to_vmem [thread:$0]  %s138_s0, 256, %s15_s7, [#allocation3]  }
  0x11   :  { %98 = dma.done.wait [#allocation3], 256  }
  0x12   :  { %99 = vsyncadd [#allocation3], 4294967040  ;;  %v21_v0 = vld [vmem:[#allocation2] sm:$0xff]  ;;  %v22_v1 = vld [vmem:[#allocation2 + $0x8] sm:$0xff]  ;;  %s103_s18 = smov [#allocation5]  }
  0x13   :  { %v23_v2 = vmul.f32 16.0, %v21_v0  ;;  %v24_v3 = vmul.f32 16.0, %v22_v1  ;;  %s41_s19 = sshll.u32 %s103_s18, 4  ;;  %s42_s19 = int_to_ptr.vmem [resolvable:$true] %s41_s19 }
  0x14   :  { %s76_s0 = scalar_lea.vmem %s42_s19, 256  ;;  %p81_p9 = scmp.lt.s32.totalorder %s42_s19, %s42_s19 }
  0x15   :  { %v50_v4 = vround.rtne.f32 %v23_v2  ;;  %v51_v5 = vround.rtne.f32 %v24_v3  ;;  %p77_p8 = scmp.ne.s32.totalorder %s42_s19, %s76_s0  ;;  %p82_p10 = scmp.lt.s32.totalorder %s76_s0, %s76_s0 }
  0x17   :  { %v27_v6 = vmax.f32 %v50_v4, -128.0  ;;  %v28_v7 = vmax.f32 %v51_v5, -128.0  ;;  %p83_p11 = por %p82_p10, %p81_p9 }
  0x19   :  { %v29_v8 = vmin.f32 %v27_v6, 127.0  ;;  %v30_v9 = vmin.f32 %v28_v7, 127.0  ;;  %p84_p12 = pnand %p83_p11, %p77_p8 }
  0x1b   :  { %v31_v10 = vmul.f32 0.0625, %v29_v8  ;;  %v32_v11 = vmul.f32 0.0625, %v30_v9 }
  0x1d   :  { %33 = vst [vmem:[#allocation5] sm:$0xff] %v31_v10  ;;  %34 = vst [vmem:[#allocation5 + $0x8] sm:$0xff] %v32_v11 }
  0x1e   :  { %87 = shalt.err (!%p84_p12)
}
  0x1f   :  { %s88_s22 = scalar_lea.hbm %s139_s1, 256 }
  0x20   :  { %p89_p13 = scmp.ne.s32.totalorder %s139_s1, %s88_s22  ;;  %p92_p0 = scmp.lt.u32.totalorder %s88_s22, %s139_s1 }
  0x22   :  { %p94_p1 = pnand %p92_p0, %p89_p13 }
  0x24   :  { %97 = shalt.err (!%p94_p1)
}
  0x25   :  { %44 = dma.vmem_to_hbm [thread:$0]  %s42_s19, 256, %s139_s1, [#allocation4]  }
  0x26   :  { %100 = dma.done.wait [#allocation4], 256  }
  0x27   :  { %101 = vsyncadd [#allocation4], 4294967040 }
  0x28   :  { %48 = vsyncpa [#allocation3], 1 }
  0x29   :  { %49 = vsyncpa [#allocation4], 1 }

</bundles_post_ra>
